<compile_context>
chip_gen: v6e
topology: v6e:2x2x1
jax: 0.10.0
libtpu: 0.0.40
codegen_flags: <defaults>
</compile_context>

<pallas_src>
import functools

import jax
import jax.numpy as jnp
from jax.experimental import pallas as pl
from jax.experimental.pallas import tpu as pltpu

S = 7
B_BOX = 1
L_COORD = 5.0
L_NOOBJ = 0.5
FEAT = 5 * B_BOX + 20  # 25

_LANE = 128
_TILE_MAX = 8192  # lanes per grid step (multiple of 128); ~1 MiB/block in f32


def _round_up(x, m):
    return ((x + m - 1) // m) * m


def _yolo_loss_kernel(pred_ref, tgt_ref, out_ref, acc_ref, *, batchsize):
    """One grid step over a (FEAT, TILE) slab: channels on sublanes, cells on lanes."""
    i = pl.program_id(0)

    @pl.when(i == 0)
    def _init():
        acc_ref[0] = jnp.float32(0.0)

    p = pred_ref[...].astype(jnp.float32)   # (25, TILE)
    t = tgt_ref[...].astype(jnp.float32)    # (25, TILE)

    obj = t[4:5, :] > 0.0                   # (1, TILE): cells containing an object

    # --- coordinate terms: (x, y) and (sqrt(w), sqrt(h)) ---
    dxy = p[0:2, :] - t[0:2, :]
    xy_sq = jnp.sum(dxy * dxy, axis=0, keepdims=True)           # (1, TILE)

    pw = jnp.where(obj, p[2:4, :], 1.0)     # guard: sqrt never sees masked garbage
    tw = jnp.where(obj, t[2:4, :], 1.0)
    dwh = jnp.sqrt(pw) - jnp.sqrt(tw)
    wh_sq = jnp.sum(dwh * dwh, axis=0, keepdims=True)            # (1, TILE)

    # --- class term over the 20 class channels ---
    dcls = p[5:FEAT, :] - t[5:FEAT, :]
    cls_sq = jnp.sum(dcls * dcls, axis=0, keepdims=True)         # (1, TILE)

    # --- per-cell IoU, replicating compute_iou (including its area2 bug) ---
    half = 0.5 * float(S)
    px, py = p[0:1, :], p[1:2, :]
    pwid, phei, pconf = p[2:3, :], p[3:4, :], p[4:5, :]
    tx, ty = t[0:1, :], t[1:2, :]
    twid, thei = t[2:3, :], t[3:4, :]

    b1x1 = px - half * pwid
    b1y1 = py - half * phei
    b1x2 = px + half * pwid
    b1y2 = py + half * phei
    b2x1 = tx - half * twid
    b2y1 = ty - half * thei
    b2x2 = tx + half * twid
    b2y2 = ty + half * thei

    iw = jnp.maximum(jnp.minimum(b1x2, b2x2) - jnp.maximum(b1x1, b2x1), 0.0)
    ih = jnp.maximum(jnp.minimum(b1y2, b2y2) - jnp.maximum(b1y1, b2y1), 0.0)
    inter = iw * ih
    area1 = (b1x2 - b1x1) * (b1y2 - b1y1)
    # NOTE: intentionally mirrors the reference bug: area2 mixes box1 coords.
    area2 = (b2x2 - b1x1) * (b1y2 - b1y1)
    denom = jnp.where(obj, area1 + area2 - inter, 1.0)   # avoid 0/0 on masked cells
    iou = inter * pl.reciprocal(denom, approx=False)     # EUP slot, off the VALU path

    dres = pconf - iou
    res_sq = dres * dres                                          # (1, TILE)

    # --- single fused masked summand -> one full cross-lane reduce per tile ---
    per_cell = L_COORD * (xy_sq + wh_sq) + cls_sq + res_sq
    masked = jnp.where(obj, per_cell, 0.0)

    # noobj_loss: reference compares pred[noobj] against itself -> identically 0,
    # so the L_NOOBJ term drops out.
    # TODO(synk): if the reference ever fixes its target_noobj bug, add
    #             L_NOOBJ * sum((pred_conf - tgt_conf)^2 over noobj cells) here.

    total = acc_ref[0] + jnp.sum(masked)
    acc_ref[0] = total
    out_ref[0] = total / jnp.float32(batchsize)


def yolov1_loss(pred, target):
    """pred, target: (batch, S, S, 25) float arrays. Returns scalar f32 loss."""
    batch = pred.shape[0]
    n = batch * S * S

    tile = min(_TILE_MAX, _round_up(n, _LANE))
    n_pad = _round_up(n, tile)

    # (batch, S, S, 25) -> (25, n): cells on the fast lane axis, channels on sublanes.
    # Keep the native input dtype in HBM; the kernel casts to f32 internally.
    pred2 = jnp.transpose(pred.reshape(n, FEAT))
    tgt2 = jnp.transpose(target.reshape(n, FEAT))
    if n_pad != n:
        padding = ((0, 0), (0, n_pad - n))
        pred2 = jnp.pad(pred2, padding)   # padded cells get target conf 0 -> masked out
        tgt2 = jnp.pad(tgt2, padding)

    kernel = functools.partial(_yolo_loss_kernel, batchsize=batch)
    out = pl.pallas_call(
        kernel,
        out_shape=jax.ShapeDtypeStruct((1,), jnp.float32),
        grid=(n_pad // tile,),
        in_specs=[
            pl.BlockSpec((FEAT, tile), lambda i: (0, i)),
            pl.BlockSpec((FEAT, tile), lambda i: (0, i)),
        ],
        out_specs=pl.BlockSpec(memory_space=pltpu.MemorySpace.SMEM),
        scratch_shapes=[pltpu.SMEM((1,), jnp.float32)],
        compiler_params=pltpu.CompilerParams(
            dimension_semantics=("arbitrary",)),
    )(pred2, tgt2)
    return out[0]


if __name__ == "__main__":
    key = jax.random.PRNGKey(0)
    k_pred, k_tgt, k_mask = jax.random.split(key, 3)

    batch = 2
    # positive values so sqrt(w), sqrt(h) are well defined (as in YOLO-style targets)
    pred = jax.random.uniform(k_pred, (batch, S, S, FEAT),
                              minval=0.05, maxval=1.0, dtype=jnp.float32)
    target = jax.random.uniform(k_tgt, (batch, S, S, FEAT),
                                minval=0.05, maxval=1.0, dtype=jnp.float32)
    # roughly 40% of cells contain an object; the rest have confidence exactly 0
    obj_cells = jax.random.uniform(k_mask, (batch, S, S)) < 0.4
    target = target.at[..., 4].set(
        jnp.where(obj_cells, target[..., 4], 0.0))

    loss_val = yolov1_loss(pred, target)
    jax.block_until_ready(loss_val)
    print("KERNEL_OK")
</pallas_src>

<mosaic_0001>
module attributes {stable_mosaic.version = 11 : i64} {
  func.func @_yolo_loss_kernel(%arg0: i32, %arg1: memref<25x128xf32, #tpu.memory_space<vmem>>, %arg2: memref<25x128xf32, #tpu.memory_space<vmem>>, %arg3: memref<1xf32, #tpu.memory_space<smem>>, %arg4: memref<1xf32, #tpu.memory_space<smem>>) attributes {dimension_semantics = [#tpu.dimension_semantics<arbitrary>], iteration_bounds = array<i64: 1>, scalar_prefetch = 0 : i64, scratch_operands = 1 : i64, tpu.core_type = #tpu.core_type<tc>, window_params = [{transform_indices = @transform_0, window_bounds = array<i64: 25, 128>}, {transform_indices = @transform_1, window_bounds = array<i64: 25, 128>}, {transform_indices = @transform_2, window_bounds = array<i64: 1>}]} {
    %c0_i32 = arith.constant 0 : i32
    %0 = arith.cmpi eq, %arg0, %c0_i32 : i32
    %1 = arith.extui %0 : i1 to i32
    %c0_i32_0 = arith.constant 0 : i32
    %2 = arith.cmpi ne, %1, %c0_i32_0 : i32
    scf.if %2 {
      %cst_27 = arith.constant 0.000000e+00 : f32
      %c0_28 = arith.constant 0 : index
      %110 = memref.load %arg4[%c0_28] : memref<1xf32, #tpu.memory_space<smem>>
      memref.store %cst_27, %arg4[%c0_28] : memref<1xf32, #tpu.memory_space<smem>>
    } else {
    }
    %c0 = arith.constant 0 : index
    %c0_1 = arith.constant 0 : index
    %3 = vector.load %arg1[%c0, %c0_1] : memref<25x128xf32, #tpu.memory_space<vmem>>, vector<25x128xf32>
    %c0_2 = arith.constant 0 : index
    %c0_3 = arith.constant 0 : index
    %4 = vector.load %arg2[%c0_2, %c0_3] : memref<25x128xf32, #tpu.memory_space<vmem>>, vector<25x128xf32>
    %5 = vector.extract_strided_slice %4 {offsets = [4, 0], sizes = [1, 128], strides = [1, 1]} : vector<25x128xf32> to vector<1x128xf32>
    %cst = arith.constant 0.000000e+00 : f32
    %6 = vector.broadcast %cst : f32 to vector<1x128xf32>
    %7 = arith.cmpf ogt, %5, %6 : vector<1x128xf32>
    %8 = vector.extract_strided_slice %3 {offsets = [0, 0], sizes = [2, 128], strides = [1, 1]} : vector<25x128xf32> to vector<2x128xf32>
    %9 = vector.extract_strided_slice %4 {offsets = [0, 0], sizes = [2, 128], strides = [1, 1]} : vector<25x128xf32> to vector<2x128xf32>
    %10 = arith.subf %8, %9 : vector<2x128xf32>
    %11 = arith.mulf %10, %10 : vector<2x128xf32>
    %cst_4 = arith.constant dense<0.000000e+00> : vector<128xf32>
    %12 = vector.multi_reduction <add>, %11, %cst_4 [0] : vector<2x128xf32> to vector<128xf32>
    %13 = vector.shape_cast %12 : vector<128xf32> to vector<1x128xf32>
    %14 = vector.extract_strided_slice %3 {offsets = [2, 0], sizes = [2, 128], strides = [1, 1]} : vector<25x128xf32> to vector<2x128xf32>
    %cst_5 = arith.constant 1.000000e+00 : f32
    %15 = vector.shape_cast %7 : vector<1x128xi1> to vector<1x128xi1>
    %16 = vector.broadcast %15 : vector<1x128xi1> to vector<2x128xi1>
    %17 = vector.broadcast %cst_5 : f32 to vector<2x128xf32>
    %18 = arith.select %16, %14, %17 : vector<2x128xi1>, vector<2x128xf32>
    %19 = vector.extract_strided_slice %4 {offsets = [2, 0], sizes = [2, 128], strides = [1, 1]} : vector<25x128xf32> to vector<2x128xf32>
    %cst_6 = arith.constant 1.000000e+00 : f32
    %20 = vector.shape_cast %7 : vector<1x128xi1> to vector<1x128xi1>
    %21 = vector.broadcast %20 : vector<1x128xi1> to vector<2x128xi1>
    %22 = vector.broadcast %cst_6 : f32 to vector<2x128xf32>
    %23 = arith.select %21, %19, %22 : vector<2x128xi1>, vector<2x128xf32>
    %24 = math.sqrt %18 : vector<2x128xf32>
    %25 = math.sqrt %23 : vector<2x128xf32>
    %26 = arith.subf %24, %25 : vector<2x128xf32>
    %27 = arith.mulf %26, %26 : vector<2x128xf32>
    %cst_7 = arith.constant dense<0.000000e+00> : vector<128xf32>
    %28 = vector.multi_reduction <add>, %27, %cst_7 [0] : vector<2x128xf32> to vector<128xf32>
    %29 = vector.shape_cast %28 : vector<128xf32> to vector<1x128xf32>
    %30 = vector.extract_strided_slice %3 {offsets = [5, 0], sizes = [20, 128], strides = [1, 1]} : vector<25x128xf32> to vector<20x128xf32>
    %31 = vector.extract_strided_slice %4 {offsets = [5, 0], sizes = [20, 128], strides = [1, 1]} : vector<25x128xf32> to vector<20x128xf32>
    %32 = arith.subf %30, %31 : vector<20x128xf32>
    %33 = arith.mulf %32, %32 : vector<20x128xf32>
    %cst_8 = arith.constant dense<0.000000e+00> : vector<128xf32>
    %34 = vector.multi_reduction <add>, %33, %cst_8 [0] : vector<20x128xf32> to vector<128xf32>
    %35 = vector.shape_cast %34 : vector<128xf32> to vector<1x128xf32>
    %36 = vector.extract_strided_slice %3 {offsets = [0, 0], sizes = [1, 128], strides = [1, 1]} : vector<25x128xf32> to vector<1x128xf32>
    %37 = vector.extract_strided_slice %3 {offsets = [1, 0], sizes = [1, 128], strides = [1, 1]} : vector<25x128xf32> to vector<1x128xf32>
    %38 = vector.extract_strided_slice %3 {offsets = [2, 0], sizes = [1, 128], strides = [1, 1]} : vector<25x128xf32> to vector<1x128xf32>
    %39 = vector.extract_strided_slice %3 {offsets = [3, 0], sizes = [1, 128], strides = [1, 1]} : vector<25x128xf32> to vector<1x128xf32>
    %40 = vector.extract_strided_slice %3 {offsets = [4, 0], sizes = [1, 128], strides = [1, 1]} : vector<25x128xf32> to vector<1x128xf32>
    %41 = vector.extract_strided_slice %4 {offsets = [0, 0], sizes = [1, 128], strides = [1, 1]} : vector<25x128xf32> to vector<1x128xf32>
    %42 = vector.extract_strided_slice %4 {offsets = [1, 0], sizes = [1, 128], strides = [1, 1]} : vector<25x128xf32> to vector<1x128xf32>
    %43 = vector.extract_strided_slice %4 {offsets = [2, 0], sizes = [1, 128], strides = [1, 1]} : vector<25x128xf32> to vector<1x128xf32>
    %44 = vector.extract_strided_slice %4 {offsets = [3, 0], sizes = [1, 128], strides = [1, 1]} : vector<25x128xf32> to vector<1x128xf32>
    %cst_9 = arith.constant 3.500000e+00 : f32
    %45 = vector.broadcast %cst_9 : f32 to vector<1x128xf32>
    %46 = arith.mulf %45, %38 : vector<1x128xf32>
    %47 = arith.subf %36, %46 : vector<1x128xf32>
    %cst_10 = arith.constant 3.500000e+00 : f32
    %48 = vector.broadcast %cst_10 : f32 to vector<1x128xf32>
    %49 = arith.mulf %48, %39 : vector<1x128xf32>
    %50 = arith.subf %37, %49 : vector<1x128xf32>
    %cst_11 = arith.constant 3.500000e+00 : f32
    %51 = vector.broadcast %cst_11 : f32 to vector<1x128xf32>
    %52 = arith.mulf %51, %38 : vector<1x128xf32>
    %53 = arith.addf %36, %52 : vector<1x128xf32>
    %cst_12 = arith.constant 3.500000e+00 : f32
    %54 = vector.broadcast %cst_12 : f32 to vector<1x128xf32>
    %55 = arith.mulf %54, %39 : vector<1x128xf32>
    %56 = arith.addf %37, %55 : vector<1x128xf32>
    %cst_13 = arith.constant 3.500000e+00 : f32
    %57 = vector.broadcast %cst_13 : f32 to vector<1x128xf32>
    %58 = arith.mulf %57, %43 : vector<1x128xf32>
    %59 = arith.subf %41, %58 : vector<1x128xf32>
    %cst_14 = arith.constant 3.500000e+00 : f32
    %60 = vector.broadcast %cst_14 : f32 to vector<1x128xf32>
    %61 = arith.mulf %60, %44 : vector<1x128xf32>
    %62 = arith.subf %42, %61 : vector<1x128xf32>
    %cst_15 = arith.constant 3.500000e+00 : f32
    %63 = vector.broadcast %cst_15 : f32 to vector<1x128xf32>
    %64 = arith.mulf %63, %43 : vector<1x128xf32>
    %65 = arith.addf %41, %64 : vector<1x128xf32>
    %cst_16 = arith.constant 3.500000e+00 : f32
    %66 = vector.broadcast %cst_16 : f32 to vector<1x128xf32>
    %67 = arith.mulf %66, %44 : vector<1x128xf32>
    %68 = arith.addf %42, %67 : vector<1x128xf32>
    %69 = arith.minimumf %53, %65 : vector<1x128xf32>
    %70 = arith.maximumf %47, %59 : vector<1x128xf32>
    %71 = arith.subf %69, %70 : vector<1x128xf32>
    %cst_17 = arith.constant 0.000000e+00 : f32
    %72 = vector.broadcast %cst_17 : f32 to vector<1x128xf32>
    %73 = arith.maximumf %71, %72 : vector<1x128xf32>
    %74 = arith.minimumf %56, %68 : vector<1x128xf32>
    %75 = arith.maximumf %50, %62 : vector<1x128xf32>
    %76 = arith.subf %74, %75 : vector<1x128xf32>
    %cst_18 = arith.constant 0.000000e+00 : f32
    %77 = vector.broadcast %cst_18 : f32 to vector<1x128xf32>
    %78 = arith.maximumf %76, %77 : vector<1x128xf32>
    %79 = arith.mulf %73, %78 : vector<1x128xf32>
    %80 = arith.subf %53, %47 : vector<1x128xf32>
    %81 = arith.subf %56, %50 : vector<1x128xf32>
    %82 = arith.mulf %80, %81 : vector<1x128xf32>
    %83 = arith.subf %65, %47 : vector<1x128xf32>
    %84 = arith.subf %56, %50 : vector<1x128xf32>
    %85 = arith.mulf %83, %84 : vector<1x128xf32>
    %86 = arith.addf %82, %85 : vector<1x128xf32>
    %87 = arith.subf %86, %79 : vector<1x128xf32>
    %cst_19 = arith.constant 1.000000e+00 : f32
    %88 = vector.broadcast %cst_19 : f32 to vector<1x128xf32>
    %89 = arith.select %7, %87, %88 : vector<1x128xi1>, vector<1x128xf32>
    %90 = tpu.reciprocal %89 : vector<1x128xf32> -> vector<1x128xf32>
    %91 = arith.mulf %79, %90 : vector<1x128xf32>
    %92 = arith.subf %40, %91 : vector<1x128xf32>
    %93 = arith.mulf %92, %92 : vector<1x128xf32>
    %94 = arith.addf %13, %29 : vector<1x128xf32>
    %cst_20 = arith.constant 5.000000e+00 : f32
    %95 = vector.broadcast %cst_20 : f32 to vector<1x128xf32>
    %96 = arith.mulf %95, %94 : vector<1x128xf32>
    %97 = arith.addf %96, %35 : vector<1x128xf32>
    %98 = arith.addf %97, %93 : vector<1x128xf32>
    %cst_21 = arith.constant 0.000000e+00 : f32
    %99 = vector.broadcast %cst_21 : f32 to vector<1x128xf32>
    %100 = arith.select %7, %98, %99 : vector<1x128xi1>, vector<1x128xf32>
    %c0_22 = arith.constant 0 : index
    %101 = memref.load %arg4[%c0_22] : memref<1xf32, #tpu.memory_space<smem>>
    %102 = vector.shape_cast %100 : vector<1x128xf32> to vector<1x1x128xf32>
    %cst_23 = arith.constant dense<0.000000e+00> : vector<1xf32>
    %103 = vector.multi_reduction <add>, %102, %cst_23 [1, 2] : vector<1x1x128xf32> to vector<1xf32>
    %104 = vector.shape_cast %103 : vector<1xf32> to vector<1x1x1xf32>
    %105 = vector.extract %104[0, 0, 0] : f32 from vector<1x1x1xf32>
    %106 = arith.addf %101, %105 : f32
    %c0_24 = arith.constant 0 : index
    %107 = memref.load %arg4[%c0_24] : memref<1xf32, #tpu.memory_space<smem>>
    memref.store %106, %arg4[%c0_24] : memref<1xf32, #tpu.memory_space<smem>>
    %cst_25 = arith.constant 2.000000e+00 : f32
    %108 = arith.divf %106, %cst_25 : f32
    %c0_26 = arith.constant 0 : index
    %109 = memref.load %arg3[%c0_26] : memref<1xf32, #tpu.memory_space<smem>>
    memref.store %108, %arg3[%c0_26] : memref<1xf32, #tpu.memory_space<smem>>
    return
  }
  func.func @transform_0(%arg0: i32) -> (i32, i32) {
    %c0_i32 = arith.constant 0 : i32
    %c0_i32_0 = arith.constant 0 : i32
    return %c0_i32, %arg0 : i32, i32
  }
  func.func @transform_1(%arg0: i32) -> (i32, i32) {
    %c0_i32 = arith.constant 0 : i32
    %c0_i32_0 = arith.constant 0 : i32
    return %c0_i32, %arg0 : i32, i32
  }
  func.func @transform_2(%arg0: i32) -> i32 {
    %c0_i32 = arith.constant 0 : i32
    %c0_i32_0 = arith.constant 0 : i32
    return %c0_i32 : i32
  }
}

</mosaic_0001>

<bundles_post_ra>
// kernel: tpu_custom_call.1
= control target key start
LH: loop header
LB: loop body
LE: loop exit
PB: predicated region body
PF: predicated region fallthrough
CT: control target
= control target key end

     0   :  { %7 = vsyncpa [#allocation4], 0  ;;  %s338_s0 = inlined_call_operand.hbm [shape: f32[25,128], index: 0, kind: input, shape index: {}]   ;;  %s339_s1 = inlined_call_operand.hbm [shape: f32[25,128], index: 1, kind: input, shape index: {}]   ;;  %s340_s2 = inlined_call_operand.hbm [shape: f32[1], index: 2, kind: output, shape index: {}]  }
   0x1   :  { %8 = vsyncpa [#allocation7], 0 }
   0x2   :  { %9 = vsyncpa [#allocation5], 0  ;;  %s284_s9 = smov [#allocation3]  }
   0x3   :  { %s15_s10 = sshll.u32 %s284_s9, 4  ;;  %s16_s10 = int_to_ptr.vmem [resolvable:$true] %s15_s10 }
   0x4   :  { %s238_s11 = scalar_lea.vmem %s16_s10, 512  ;;  %p243_p1 = scmp.lt.s32.totalorder %s16_s10, %s16_s10 }
   0x5   :  { %p239_p0 = scmp.ne.s32.totalorder %s16_s10, %s238_s11  ;;  %p244_p2 = scmp.lt.s32.totalorder %s238_s11, %s238_s11 }
   0x7   :  { %p245_p3 = por %p244_p2, %p243_p1 }
   0x9   :  { %p246_p4 = pnand %p245_p3, %p239_p0 }
   0xb   :  { %249 = shalt.err (!%p246_p4)
}
   0xc   :  { %s285_s12 = smov 128   ;;  %s286_s13 = smov 8  }
   0xd   :  { %21 = dma.hbm_to_vmem [thread:$0]  %s338_s0, 512, %s16_s10, [#allocation4], %s285_s12, %s285_s12, %s286_s13  }
   0xe   :  { %s287_s16 = smov [#allocation6]  }
   0xf   :  { %s27_s17 = sshll.u32 %s287_s16, 4  ;;  %s28_s17 = int_to_ptr.vmem [resolvable:$true] %s27_s17 }
  0x10   :  { %s258_s18 = scalar_lea.vmem %s28_s17, 512  ;;  %p263_p6 = scmp.lt.s32.totalorder %s28_s17, %s28_s17 }
  0x11   :  { %p259_p5 = scmp.ne.s32.totalorder %s28_s17, %s258_s18  ;;  %p264_p7 = scmp.lt.s32.totalorder %s258_s18, %s258_s18 }
  0x13   :  { %p265_p8 = por %p264_p7, %p263_p6 }
  0x15   :  { %p266_p9 = pnand %p265_p8, %p259_p5 }
  0x17   :  { %269 = shalt.err (!%p266_p9)
}
  0x18   :  { %33 = dma.hbm_to_vmem [thread:$0]  %s339_s1, 512, %s28_s17, [#allocation7], %s285_s12, %s285_s12, %s286_s13  }
  0x19   :  { %278 = dma.done.wait [#allocation4], 512  }
  0x1a   :  { %279 = vsyncadd [#allocation4], 4294966784 }
  0x1b   :  { %280 = dma.done.wait [#allocation7], 512  }
  0x1c   :  { %281 = vsyncadd [#allocation7], 4294966784  ;;  %v66_v0 = vlaneseq  ;;  %v311_v2 = vld [vmem:[#allocation3] sm:$0xff]  ;;  %v47_v3 = vld [vmem:[#allocation3 + $0x8] sm:$0xff]  ;;  %v288_v14 = vmov 0   ;;  %vm109_vm2 = vcmask 1042432  }
  0x1d   :  { %v48_v4 = vld [vmem:[#allocation3 + $0x10] sm:$0xff]  ;;  %v49_v6 = vld [vmem:[#allocation3 + $0x18] sm:$0x1]  ;;  %v313_v7 = vld [vmem:[#allocation6] sm:$0xff]  ;;  %v130_v9 = vmul.f32 3.5, %v311_v2  ;;  %vm57_vm3 = vcmask 1041408  }
  0x1e   :  { %v67_v1 = vshrl.u32 %v66_v0, 7  ;;  %v51_v8 = vld [vmem:[#allocation6 + $0x8] sm:$0xff]  ;;  %v52_v10 = vld [vmem:[#allocation6 + $0x10] sm:$0xff]  ;;  %v53_v11 = vld [vmem:[#allocation6 + $0x18] sm:$0x1]  ;;  %vm54_vm0 = vcmp.gt.f32.partialorder %v313_v7, 0.0  ;;  %v55_v12 = vsub.f32 %v311_v2, %v313_v7 }
  0x1f   :  { %v99_v13 = vsub.f32 %v47_v3, %v51_v8  ;;  %v65_v15 = vsel %vm54_vm0, 1, %v288_v14  ;;  %v100_v16 = vsub.f32 %v48_v4, %v52_v10  ;;  %v136_v17 = vmul.f32 3.5, %v313_v7  ;;  %s289_s21 = smov [#allocation8]  }
  0x20   :  { %v68_v5 = vsub.s32 4, %v67_v1  ;;  %v101_v19 = vsub.f32 %v49_v6, %v53_v11  ;;  %v132_v20 = vrot.slane %v130_v9, 2  ;;  %v56_v21 = vmul.f32 %v55_v12, %v55_v12 }
  0x21   :  { %v102_v22 = vmul.f32 %v99_v13, %v99_v13  ;;  %v103_v25 = vmul.f32 %v100_v16, %v100_v16  ;;  %v138_v26 = vrot.slane %v136_v17, 2  ;;  %vm121_vm4 = vcmask 1043456  }
  0x22   :  { %v69_v18 = vrot.slane %v65_v15, %v68_v5  ;;  %v104_v27 = vmul.f32 %v101_v19, %v101_v19  ;;  %v134_v28 = vsub.f32 %v311_v2, %v132_v20  ;;  %v135_v29 = vadd.f32 %v132_v20, %v311_v2 }
  0x23   :  { %v110_v30 = vrot.slane %v56_v21, 5  ;;  %v111_v31 = vrot.slane %v102_v22, 5  ;;  %v113_v32 = vrot.slane %v103_v25, 5  ;;  %v140_v33 = vsub.f32 %v313_v7, %v138_v26 }
  0x24   :  { %vm70_vm1 = vcmp.eq.s32.totalorder %v69_v18, 1  ;;  %v141_v34 = vadd.f32 %v138_v26, %v313_v7  ;;  %v115_v35 = vrot.slane %v104_v27, 5  ;;  %v150_v36 = vsub.f32 %v135_v29, %v134_v28 }
  0x25   :  { %v71_v23 = vsel %vm70_vm1, %v311_v2, 1.0  ;;  %v72_v24 = vsel %vm70_vm1, %v313_v7, 1.0  ;;  %v143_v38 = vmax.f32 %v134_v28, %v140_v33  ;;  %v112_v41 = vsel %vm109_vm2, %v110_v30, %v111_v31 }
  0x26   :  { %224 = vrsqrt.f32 %v71_v23  ;;  %v142_v37 = vmin.f32 %v135_v29, %v141_v34  ;;  %v152_v39 = vrot.slane %v150_v36, 1  ;;  %v155_v40 = vsub.f32 %v141_v34, %v134_v28 }
  0x27   :  { %226 = vrsqrt.f32 %v72_v24  ;;  %v114_v42 = vsel %vm109_vm2, %v111_v31, %v113_v32  ;;  %v116_v44 = vsel %vm109_vm2, %v113_v32, %v115_v35  ;;  %v58_v47 = vsel %vm57_vm3, %v56_v21, 0.0 }
  0x28   :  { %v144_v43 = vsub.f32 %v142_v37, %v143_v38  ;;  %v154_v45 = vmul.f32 %v152_v39, %v150_v36  ;;  %v156_v46 = vmul.f32 %v155_v40, %v152_v39  ;;  %v120_v49 = vadd.f32 %v114_v42, %v112_v41 }
  0x29   :  { %v122_v50 = vsel %vm121_vm4, %v116_v44, 0.0  ;;  %v59_v53 = vrot.slane %v58_v47, 4  ;;  %vm75_vm5 = vcmp.eq.f32.partialorder %v71_v23, inf  ;;  %vm77_vm6 = vcmp.eq.f32.partialorder %v71_v23, 0.0 }
  0x2a   :  { %v145_v48 = vmax.f32 %v144_v43, 0.0  ;;  %v157_v52 = vadd.f32 %v156_v46, %v154_v45  ;;  %v78_v55 = vand.u32 2147483648, %v71_v23  ;;  %vm82_vm7 = vcmp.eq.f32.partialorder %v72_v24, inf }
  0x2b   :  { %v85_v59 = vand.u32 2147483648, %v72_v24  ;;  %v123_v60 = vadd.f32 %v122_v50, %v120_v49  ;;  %vm84_vm8 = vcmp.eq.f32.partialorder %v72_v24, 0.0  ;;  %v60_v4 = vadd.f32 %v59_v53, %v58_v47 }
  0x2c   :  { %v147_v51 = vrot.slane %v145_v48, 1  ;;  %vm182_vm9 = vcmask 1040384  }
  0x2d   :  { %v124_v6 = vrot.slane %v123_v60, 4  ;;  %v61_v11 = vrot.slane %v60_v4, 2 }
  0x2e   :  { %v149_v56 = vmul.f32 %v147_v51, %v145_v48 }
  0x2f   :  { %v125_v12 = vadd.f32 %v124_v6, %v123_v60  ;;  %v62_v15 = vadd.f32 %v61_v11, %v60_v4 }
  0x30   :  { %v158_v62 = vsub.f32 %v157_v52, %v149_v56 }
  0x31   :  { %v126_v17 = vrot.slane %v125_v12, 2  ;;  %v63_v19 = vrot.slane %v62_v15, 1 }
  0x32   :  { %v160_v3 = vrot.slane %v158_v62, 4 }
  0x33   :  { %v225_v54 = vpop.eup %224  ;;  %v127_v21 = vadd.f32 %v126_v17, %v125_v12 }
  0x34   :  { %v227_v57 = vpop.eup %226  ;;  %v74_v58 = vmul.f32 %v225_v54, %v71_v23  ;;  %v162_v9 = vsel %vm54_vm0, %v160_v3, 1.0 }
  0x35   :  { %v81_v61 = vmul.f32 %v227_v57, %v72_v24  ;;  %228 = vrcp.f32 %v162_v9  ;;  %v128_v26 = vrot.slane %v127_v21, 1 }
  0x36   :  { %v76_v63 = vsel %vm75_vm5, %v71_v23, %v74_v58 }
  0x37   :  { %v79_v0 = vsel %vm77_vm6, %v78_v55, %v76_v63  ;;  %v83_v1 = vsel %vm82_vm7, %v72_v24, %v81_v61  ;;  %v64_v24 = vadd.f32 %v63_v19, %v62_v15  ;;  %v129_v30 = vadd.f32 %v128_v26, %v127_v21 }
  0x38   :  { %v86_v5 = vsel %vm84_vm8, %v85_v59, %v83_v1 }
  0x39   :  { %v87_v8 = vsub.f32 %v79_v0, %v86_v5 }
  0x3b   :  { %v88_v10 = vmul.f32 %v87_v8, %v87_v8 }
  0x3d   :  { %v90_v13 = vrot.slane %v88_v10, 2 }
  0x3f   :  { %v92_v14 = vsel %vm57_vm3, %v90_v13, 0.0 }
  0x40   :  { %v93_v16 = vrot.slane %v92_v14, 4 }
  0x42   :  { %v94_v18 = vadd.f32 %v93_v16, %v92_v14  ;;  %v229_v23 = vpop.eup %228 }
  0x43   :  { %v165_v27 = vrot.slane %v229_v23, 4 }
  0x44   :  { %v95_v20 = vrot.slane %v94_v18, 2 }
  0x45   :  { %v167_v29 = vmul.f32 %v165_v27, %v149_v56 }
  0x46   :  { %v96_v22 = vadd.f32 %v95_v20, %v94_v18 }
  0x47   :  { %v169_v31 = vrot.slane %v167_v29, 4 }
  0x48   :  { %v97_v25 = vrot.slane %v96_v22, 1 }
  0x49   :  { %v171_v33 = vsub.f32 %v311_v2, %v169_v31 }
  0x4a   :  { %v98_v28 = vadd.f32 %v97_v25, %v96_v22 }
  0x4b   :  { %v172_v35 = vmul.f32 %v171_v33, %v171_v33 }
  0x4c   :  { %v173_v32 = vadd.f32 %v98_v28, %v64_v24 }
  0x4e   :  { %v174_v34 = vmul.f32 5.0, %v173_v32 }
  0x50   :  { %v175_v36 = vadd.f32 %v174_v34, %v129_v30 }
  0x52   :  { %v176_v37 = vadd.f32 %v175_v36, %v172_v35 }
  0x54   :  { %v177_v38 = vsel %vm54_vm0, %v176_v37, 0.0 }
  0x55   :  { %v180_v39 = vrot.slane %v177_v38, 4 }
  0x57   :  { %v183_v40 = vsel %vm182_vm9, %v180_v39, 0.0 }
  0x58   :  { %184 = vadd.xlane.f32.xlu0 %v183_v40 }
  0xe1   :  { %v185_v41 = vpop.xlane.xlu0 %184 }
  0xe2   :  { %v186_v42 = vrot.slane %v185_v41, 4 }
  0xe4   :  { %v187_v43 = vadd.f32 %v186_v42, %v185_v41 }
  0xe6   :  { %v188_v44 = vrot.slane %v187_v43, 2 }
  0xe8   :  { %v189_v45 = vadd.f32 %v188_v44, %v187_v43 }
  0xea   :  { %v190_v46 = vrot.slane %v189_v45, 1 }
  0xec   :  { %v191_v47 = vadd.f32 %v190_v46, %v189_v45 }
  0xee   :  { %216 = vpush %v191_v47 }
 0x11f   :  { %s217_s0 = spop %216 }
 0x120   :  { %s198_s1 = smul.f32 0.5, %s217_s0 }
 0x122   :  { %200 = sst [smem:[#allocation8]] %s198_s1 }
 0x123   :  { %208 = dma.smem_to_hbm %s289_s21, 16, %s340_s2, [#allocation5]  }
 0x124   :  { %282 = dma.done.wait [#allocation5], 16  }
 0x125   :  { %283 = vsyncadd [#allocation5], 4294967280 }
 0x126   :  { %212 = sfence }
 0x127   :  { %213 = vsyncpa [#allocation4], 1 }
 0x128   :  { %214 = vsyncpa [#allocation7], 1 }
 0x129   :  { %215 = vsyncpa [#allocation5], 1 }

</bundles_post_ra>
